<compile_context>
chip_gen: v5e
topology: v5e:2x2
jax: 0.10.0
libtpu: 0.0.40
codegen_flags: <defaults>
</compile_context>

<pallas_src>
import jax
import jax.numpy as jnp
from jax.experimental import pallas as pl
from jax.experimental.pallas import tpu as pltpu


def _round_up(x, m):
    return ((x + m - 1) // m) * m


# ---------------------------------------------------------------------------
# Kernel: one (tm, tn) output tile, accumulating over K blocks in f32 scratch.
# Handles both the single-K and K-tiled cases (n_k == 1 makes both pl.when true).
# ---------------------------------------------------------------------------
def _fc_kernel(x_ref, w_ref, b_ref, o_ref, acc_ref):
    k = pl.program_id(2)

    @pl.when(k == 0)
    def _():
        acc_ref[...] = jnp.zeros_like(acc_ref)

    # Cast x in-kernel (VPU cast is free on a memory-bound kernel; avoids a
    # separate un-fused XLA cast op that would double x's HBM traffic).
    acc_ref[...] += jnp.dot(x_ref[...].astype(w_ref.dtype), w_ref[...],
                            preferred_element_type=jnp.float32)

    @pl.when(k == pl.num_programs(2) - 1)
    def _():
        o_ref[...] = (acc_ref[...] + b_ref[...]).astype(o_ref.dtype)


# ---------------------------------------------------------------------------
# One-time (hoisted) parameter preparation from the nn.Conv1d(groups=D) params.
# ---------------------------------------------------------------------------
def prepare_fc_params(conv_weight, conv_bias, number_of_directions,
                      compute_dtype=jnp.bfloat16, lane_multiple=128):
    """conv_weight: [Cout*D, Cin_per_dir, 1], conv_bias: [Cout*D].
    Returns (w_big [D*Cin, Cout_pad] compute_dtype, b_sum [1, Cout_pad] f32, cout)."""
    D = number_of_directions
    cout_d, cin_per_dir, _ = conv_weight.shape
    cout = cout_d // D

    w = conv_weight[..., 0].reshape(D, cout, cin_per_dir)                # [D, Cout, Cin]
    w_big = jnp.transpose(w, (0, 2, 1)).reshape(D * cin_per_dir, cout)   # [D*Cin, Cout]
    b_sum = conv_bias.reshape(D, cout).sum(axis=0).reshape(1, cout)      # [1, Cout]

    # Only pad when Cout is not already lane-aligned; the aligned fast path
    # needs neither padding nor a post-kernel slice.
    cout_pad = _round_up(cout, lane_multiple)
    if cout_pad != cout:
        w_big = jnp.pad(w_big, ((0, 0), (0, cout_pad - cout)))
        b_sum = jnp.pad(b_sum, ((0, 0), (0, cout_pad - cout)))

    return w_big.astype(compute_dtype), b_sum.astype(jnp.float32), cout


# ---------------------------------------------------------------------------
# Generation-aware VMEM budgeting and tile selection.
# ---------------------------------------------------------------------------
def _vmem_limits():
    """Returns (vmem_limit_bytes, tiling_budget_bytes) derived from the chip.
    v5e/v6e (128 MiB physical) -> ~96 MiB limit; v7x (64 MiB) -> ~48 MiB.
    Conservative fallback (48 MiB) is safe on every generation."""
    phys = 64 << 20
    try:
        phys = int(pltpu.get_tpu_info().vmem_capacity_bytes)
    except Exception:
        pass
    vmem_limit = min(int(phys * 3 // 4), 100 << 20)
    budget = vmem_limit - (8 << 20)   # headroom for Mosaic internal scratch
    return vmem_limit, budget


def _pick_col_tile(cout_pad, k_block, w_itemsize=2, resident_limit=8 << 20):
    """Keep the whole Cout axis as a single block when the (double-buffered)
    weight tile is small: the constant index_map makes Pallas fetch it once."""
    if 2 * k_block * cout_pad * w_itemsize <= resident_limit:
        return cout_pad
    for cand in (512, 384, 256, 128):
        if cout_pad % cand == 0:        # full blocks only -> unmasked stores
            return cand
    return 128


def _pick_row_tile(n_rows, k_block, tn, x_itemsize, out_itemsize, budget_bytes,
                   w_itemsize=2):
    """Direct solve for the largest row tile that fits the VMEM budget,
    counting double-buffered x/w/out tiles, the in-kernel bf16 copy of x and
    the f32 accumulator scratch. Rounded down to a multiple of 128 (8 if small)."""
    fixed = 2 * k_block * tn * w_itemsize + 2 * tn * 4          # W tile + bias (dbl-buf)
    per_row = (2 * k_block * x_itemsize                          # x tile (dbl-buf)
               + k_block * 2                                     # in-kernel bf16 copy of x
               + 2 * tn * out_itemsize                           # out tile (dbl-buf)
               + tn * 4)                                         # f32 accumulator scratch
    tm = max((budget_bytes - fixed) // per_row, 8)
    if tm >= 128:
        tm = (tm // 128) * 128
    else:
        tm = (tm // 8) * 8
    tm = min(tm, 8192)

    # Keep >=2 row tiles whenever N permits so a 2-TC chip (v7x) gets work on both cores.
    if n_rows >= 256:
        tm = min(tm, _round_up((n_rows + 1) // 2, 128))

    n_pad = _round_up(n_rows, 8)
    tm = min(tm, n_pad)
    return max(tm, 8)


# ---------------------------------------------------------------------------
# Forward wrapper.
# ---------------------------------------------------------------------------
def fully_connected_layers_forward(x, w_big, b_sum, number_of_output_channels,
                                   out_dtype=None, max_k_block=2048):
    """Pallas forward of FullyConnectedLayers on prepared parameters.

    x       : [N, Cin_per_dir * D]   (any float dtype; cast to bf16 in-kernel)
    w_big   : [Cin_per_dir * D, Cout_pad]   (from prepare_fc_params, bf16)
    b_sum   : [1, Cout_pad]                 (f32)
    returns : [1, N, Cout]  (same as the PyTorch module)
    """
    N, cin_total = x.shape
    k_total, cout_pad = w_big.shape
    assert k_total == cin_total, (k_total, cin_total)
    cout = number_of_output_channels
    out_dtype = x.dtype if out_dtype is None else out_dtype

    # K tiling only when Cin_total is 128-aligned and large; otherwise one full K block.
    if cin_total % 128 == 0 and cin_total > max_k_block:
        tk = 128
        for cand in (2048, 1024, 512, 256, 128):
            if cand <= max_k_block and cin_total % cand == 0:
                tk = cand
                break
    else:
        tk = cin_total

    vmem_limit, budget = _vmem_limits()
    tn = _pick_col_tile(cout_pad, tk, w_itemsize=w_big.dtype.itemsize)
    tm = _pick_row_tile(N, tk, tn,
                        x_itemsize=jnp.dtype(x.dtype).itemsize,
                        out_itemsize=jnp.dtype(out_dtype).itemsize,
                        budget_bytes=budget,
                        w_itemsize=w_big.dtype.itemsize)

    grid = (pl.cdiv(N, tm), cout_pad // tn, cin_total // tk)

    cost = pl.CostEstimate(
        flops=2 * N * cin_total * cout_pad,
        transcendentals=0,
        bytes_accessed=int(N * cin_total * jnp.dtype(x.dtype).itemsize
                           + cin_total * cout_pad * w_big.dtype.itemsize
                           + cout_pad * 4
                           + N * cout_pad * jnp.dtype(out_dtype).itemsize),
    )

    out2d = pl.pallas_call(
        _fc_kernel,
        out_shape=jax.ShapeDtypeStruct((N, cout_pad), out_dtype),
        grid_spec=pltpu.PrefetchScalarGridSpec(
            num_scalar_prefetch=0,
            grid=grid,
            in_specs=[
                pl.BlockSpec((tm, tk), lambda i, j, k: (i, k)),
                pl.BlockSpec((tk, tn), lambda i, j, k: (k, j)),
                pl.BlockSpec((1, tn), lambda i, j, k: (0, j)),
            ],
            out_specs=pl.BlockSpec((tm, tn), lambda i, j, k: (i, j)),
            scratch_shapes=[pltpu.VMEM((tm, tn), jnp.float32)],
        ),
        compiler_params=pltpu.CompilerParams(
            dimension_semantics=("parallel", "parallel", "arbitrary"),
            vmem_limit_bytes=int(vmem_limit)),
        cost_estimate=cost,
    )(x, w_big, b_sum)

    if cout_pad == cout:
        out2d_final = out2d                       # fast path: no pad, no slice copy
    else:
        # TODO(synk): when Cout is not 128-aligned, prefer consuming the padded slab
        # downstream (fuse the slice into the next op) instead of this extra copy.
        out2d_final = out2d[:, :cout]
    return out2d_final[None, :, :]


# ---------------------------------------------------------------------------
# Plain-JAX (f32) re-implementation of the PyTorch forward, for verification.
# ---------------------------------------------------------------------------
def _reference_forward(x, conv_weight, conv_bias, number_of_directions):
    D = number_of_directions
    cout_d, cin_per_dir, _ = conv_weight.shape
    cout = cout_d // D
    w = conv_weight[..., 0].reshape(D, cout, cin_per_dir)   # [D, Cout, Cin]
    b = conv_bias.reshape(D, cout)                          # [D, Cout]
    xd = x.reshape(x.shape[0], D, cin_per_dir)              # [N, D, Cin]
    per_dir = jnp.einsum("ndc,doc->ndo", xd, w) + b[None]   # [N, D, Cout]
    return per_dir.sum(axis=1)[None, :, :]                  # [1, N, Cout]


if __name__ == "__main__":
    def run_case(name, n_act, cin_per_dir, cout, n_dir, max_k_block=2048, seed=0):
        key = jax.random.PRNGKey(seed)
        kx, kw, kb = jax.random.split(key, 3)
        cin_total = cin_per_dir * n_dir
        cout_total = cout * n_dir

        x = jax.random.normal(kx, (n_act, cin_total), dtype=jnp.float32)
        conv_weight = jax.random.normal(
            kw, (cout_total, cin_per_dir, 1), dtype=jnp.float32) * 0.1
        conv_bias = jax.random.normal(kb, (cout_total,), dtype=jnp.float32) * 0.1

        w_big, b_sum, c = prepare_fc_params(conv_weight, conv_bias, n_dir)
        out = fully_connected_layers_forward(x, w_big, b_sum, c,
                                             max_k_block=max_k_block)
        out = jax.block_until_ready(out)

        ref = _reference_forward(x, conv_weight, conv_bias, n_dir)
        assert out.shape == (1, n_act, cout), (name, out.shape)
        # bf16 operands (f32 MXU accumulation) vs f32 reference -> relaxed tolerance.
        assert jnp.allclose(out, ref, atol=5e-2, rtol=5e-2), f"{name}: mismatch"

    # Fast path: Cout already a multiple of 128 -> no padding, no output slice.
    run_case("aligned", n_act=512, cin_per_dir=64, cout=128, n_dir=2, seed=0)
    # Padded path: small unaligned Cout, odd activation count (masked tail blocks).
    run_case("padded", n_act=40, cin_per_dir=16, cout=32, n_dir=2, seed=1)
    # Forced K-tiled path: Cin_total=256 split into two 128-wide K blocks.
    run_case("k_tiled", n_act=256, cin_per_dir=128, cout=128, n_dir=2,
             max_k_block=128, seed=2)

    print("KERNEL_OK")
</pallas_src>

<mosaic_0001>
module attributes {stable_mosaic.version = 11 : i64} {
  func.func @_fc_kernel(%arg0: i32, %arg1: i32, %arg2: i32, %arg3: memref<256x128xf32, #tpu.memory_space<vmem>>, %arg4: memref<128x128xbf16, #tpu.memory_space<vmem>>, %arg5: memref<1x128xf32, #tpu.memory_space<vmem>>, %arg6: memref<256x128xf32, #tpu.memory_space<vmem>>, %arg7: memref<256x128xf32, #tpu.memory_space<vmem>>) attributes {dimension_semantics = [#tpu.dimension_semantics<parallel>, #tpu.dimension_semantics<parallel>, #tpu.dimension_semantics<arbitrary>], iteration_bounds = array<i64: 2, 1, 1>, scalar_prefetch = 0 : i64, scratch_operands = 1 : i64, tpu.core_type = #tpu.core_type<tc>, window_params = [{transform_indices = @transform_0, window_bounds = array<i64: 256, 128>}, {transform_indices = @transform_1, window_bounds = array<i64: 128, 128>}, {transform_indices = @transform_2, window_bounds = array<i64: 1, 128>}, {transform_indices = @transform_3, window_bounds = array<i64: 256, 128>}]} {
    %c0_i32 = arith.constant 0 : i32
    %0 = arith.cmpi eq, %arg2, %c0_i32 : i32
    %1 = arith.extui %0 : i1 to i32
    %c0_i32_0 = arith.constant 0 : i32
    %2 = arith.cmpi ne, %1, %c0_i32_0 : i32
    scf.if %2 {
      %cst_10 = arith.constant 0.000000e+00 : f32
      %13 = vector.broadcast %cst_10 : f32 to vector<256x128xf32>
      %c0_11 = arith.constant 0 : index
      %c0_12 = arith.constant 0 : index
      %14 = vector.load %arg7[%c0_11, %c0_12] : memref<256x128xf32, #tpu.memory_space<vmem>>, vector<256x128xf32>
      tpu.vector_store %arg7[%c0_11, %c0_12], %13 {strides = array<i32>} : memref<256x128xf32, #tpu.memory_space<vmem>>, vector<256x128xf32>,
    } else {
    }
    %c0 = arith.constant 0 : index
    %c0_1 = arith.constant 0 : index
    %3 = vector.load %arg7[%c0, %c0_1] : memref<256x128xf32, #tpu.memory_space<vmem>>, vector<256x128xf32>
    %c0_2 = arith.constant 0 : index
    %c0_3 = arith.constant 0 : index
    %4 = vector.load %arg3[%c0_2, %c0_3] : memref<256x128xf32, #tpu.memory_space<vmem>>, vector<256x128xf32>
    %5 = arith.truncf %4 : vector<256x128xf32> to vector<256x128xbf16>
    %c0_4 = arith.constant 0 : index
    %c0_5 = arith.constant 0 : index
    %6 = vector.load %arg4[%c0_4, %c0_5] : memref<128x128xbf16, #tpu.memory_space<vmem>>, vector<128x128xbf16>
    %cst = arith.constant dense<0.000000e+00> : vector<256x128xf32>
    %7 = tpu.matmul %5, %6, %cst {dimension_numbers = #tpu.dot_dimension_numbers<[1], [0], [0], [1], [0, 0, 1, 1], [], []>} : vector<256x128xbf16>, vector<128x128xbf16>, vector<256x128xf32> -> vector<256x128xf32>
    %8 = arith.addf %3, %7 : vector<256x128xf32>
    %c0_6 = arith.constant 0 : index
    %c0_7 = arith.constant 0 : index
    %9 = vector.load %arg7[%c0_6, %c0_7] : memref<256x128xf32, #tpu.memory_space<vmem>>, vector<256x128xf32>
    tpu.vector_store %arg7[%c0_6, %c0_7], %8 {strides = array<i32>} : memref<256x128xf32, #tpu.memory_space<vmem>>, vector<256x128xf32>,
    %c0_i32_8 = arith.constant 0 : i32
    %10 = arith.cmpi eq, %arg2, %c0_i32_8 : i32
    %11 = arith.extui %10 : i1 to i32
    %c0_i32_9 = arith.constant 0 : i32
    %12 = arith.cmpi ne, %11, %c0_i32_9 : i32
    scf.if %12 {
      %c0_10 = arith.constant 0 : index
      %c0_11 = arith.constant 0 : index
      %13 = vector.load %arg7[%c0_10, %c0_11] : memref<256x128xf32, #tpu.memory_space<vmem>>, vector<256x128xf32>
      %c0_12 = arith.constant 0 : index
      %c0_13 = arith.constant 0 : index
      %14 = vector.load %arg5[%c0_12, %c0_13] : memref<1x128xf32, #tpu.memory_space<vmem>>, vector<1x128xf32>
      %15 = vector.broadcast %14 : vector<1x128xf32> to vector<256x128xf32>
      %16 = arith.addf %13, %15 : vector<256x128xf32>
      %c0_14 = arith.constant 0 : index
      %c0_15 = arith.constant 0 : index
      %17 = vector.load %arg6[%c0_14, %c0_15] : memref<256x128xf32, #tpu.memory_space<vmem>>, vector<256x128xf32>
      tpu.vector_store %arg6[%c0_14, %c0_15], %16 {strides = array<i32>} : memref<256x128xf32, #tpu.memory_space<vmem>>, vector<256x128xf32>,
    } else {
    }
    return
  }
  func.func @transform_0(%arg0: i32, %arg1: i32, %arg2: i32) -> (i32, i32) {
    %c0_i32 = arith.constant 0 : i32
    return %arg0, %arg2 : i32, i32
  }
  func.func @transform_1(%arg0: i32, %arg1: i32, %arg2: i32) -> (i32, i32) {
    %c0_i32 = arith.constant 0 : i32
    return %arg2, %arg1 : i32, i32
  }
  func.func @transform_2(%arg0: i32, %arg1: i32, %arg2: i32) -> (i32, i32) {
    %c0_i32 = arith.constant 0 : i32
    %c0_i32_0 = arith.constant 0 : i32
    return %c0_i32, %arg1 : i32, i32
  }
  func.func @transform_3(%arg0: i32, %arg1: i32, %arg2: i32) -> (i32, i32) {
    %c0_i32 = arith.constant 0 : i32
    return %arg0, %arg1 : i32, i32
  }
}

</mosaic_0001>

<bundles_post_ra>
// kernel: tpu_custom_call.1
= control target key start
LH: loop header
LB: loop body
LE: loop exit
PB: predicated region body
PF: predicated region fallthrough
CT: control target
= control target key end

     0   :  { %s1425_s0 = inlined_call_operand.hbm [shape: f32[512,128], index: 0, kind: input, shape index: {}]   ;;  %s1426_s1 = inlined_call_operand.hbm [shape: bf16[128,128], index: 1, kind: input, shape index: {}]   ;;  %s1427_s2 = inlined_call_operand.vmem [shape: f32[1,128], index: 2, kind: input, shape index: {}]   ;;  %s1428_s3 = inlined_call_operand.hbm [shape: f32[512,128], index: 3, kind: output, shape index: {}]  }
   0x1   :  { %1429 = sst [smem:[#allocation12_spill]] %s1426_s1 }
   0x2   :  { %8 = vsyncpa [#allocation4], 0 }
   0x3   :  { %10 = vsyncpa [#allocation4 + $0x1], 0 }
   0x4   :  { %11 = vsyncpa [#allocation7], 0 }
   0x5   :  { %12 = vsyncpa [#allocation5], 0 }
   0x6   :  { %14 = vsyncpa [#allocation5 + $0x1], 0  ;;  %s1166_s12 = smov 0   ;;  %s1168_s13 = smov 0  }
   0x7   :  { %s1170_s14 = smov 0   ;;  %s1172_s15 = smov 0  }
   0x8   :  { %s1174_s16 = smov 0   ;;  %s1176_s17 = smov 0  }
   0x9 LB: > { %s827_s18 = sadd.s32 4294967295, %s1137_s17   ;;  %s828_s19 = sadd.s32 4294967294, %s1137_s17   ;;  %s1137_s17 = sphi %s1176_s17, %s20_s17   ;;  %s1133_s16 = sphi %s1174_s16, %s1442_s16   ;;  %s1129_s15 = sphi %s1172_s15, %s1441_s15   ;;  %s1125_s14 = sphi %s1170_s14, %s1440_s14   ;;  %s1121_s13 = sphi %s1168_s13, %s1439_s13   ;;  %s1117_s12 = sphi %s1166_s12, %s1438_s12  }
   0xa   : > { %p61_p0 = scmp.ne.s32.totalorder %s1121_s13, %s1117_s12  ;;  %p1200_p1 = scmp.eq.s32.totalorder %s827_s18, 0 }
   0xb   : > { %p1204_p2 = scmp.eq.s32.totalorder %s827_s18, 1  ;;  %p147_p3 = scmp.eq.s32.totalorder %s828_s19, 1 }
   0xc   : > { %p1210_p4 = por %p1200_p1, %p61_p0  ;;  %p829_p5 = scmp.ge.s32.totalorder %s1137_s17, 1 }
   0xd   : > { %p1215_p6 = por %p147_p3, %p61_p0  ;;  %p154_p7 = scmp.lt.s32.totalorder %s1137_s17, 3 }
   0xe   : > { %s1434_s1 = sld [smem:[#allocation12_spill]]  ;;  %s1139_s28 = smov [#allocation6]  }
   0xf   : > { %p1223_p8 = pnand %p829_p5, %p154_p7  ;;  %s171_s29 = sshll.u32 %s1139_s28, 4  ;;  %s172_s29 = int_to_ptr.vmem [resolvable:$true] %s171_s29 }
  0x10   : > { %p832_p11 = scmp.ge.s32.totalorder %s1137_s17, 2  ;;  %s1140_s30 = smov 64  }
  0x11   : > { %p919_p9 = pneg %p1223_p8  ;;  %s1141_s4 = smov 4  }
  0x12   : > { %s39_s5 = sadd.s32 1, %s1133_s16  ;;  %s48_s6 = sadd.s32 1, %s1125_s14 }
  0x13   : > { %p920_p10 = pnand %p919_p9, %p1200_p1  ;;  %p41_p12 = scmp.ge.s32.totalorder %s39_s5, 2 }
  0x14   : > { %s169_s26 = sshll.u32 %s1434_s1, 4  ;;  %p55_p13 = scmp.ne.s32.totalorder %s1125_s14, %s1121_s13  ;;  %s170_s26 = int_to_ptr.hbm [resolvable:$true] %s169_s26 }
  0x15   : > { %922 = dma.hbm_to_vmem [thread:$0]  (!%p920_p10), %s170_s26, 1024, %s172_s29, [#allocation7], %s1140_s30, %s1140_s30, %s1141_s4  }
  0x16   : > { %p56_p0 = scmp.eq.s32.totalorder %s1137_s17, 0  ;;  %s1444_s5 = smov (%p41_p12, %s39_s5), 0 }
  0x17   : > { %p1245_p5 = por %p1204_p2, %p55_p13  ;;  %s43_s9 = ssub.s32 %s1133_s16, %s1444_s5 }
  0x18   : > { %p1239_p3 = por %p56_p0, %p55_p13  ;;  %p932_p7 = scmp.lt.s32.totalorder %s1137_s17, 2 }
  0x19   : > { %p46_p9 = scmp.eq.s32.totalorder %s43_s9, 0  ;;  %s191_s10 = sand.u32 1, %s1125_s14  }
  0x1a   : > { %s833_s11 = sshll.u32 %s191_s10, 8  ;;  %s877_s19 = sshll.u32 %s1133_s16, 8 }
  0x1b   : > { %s1254_s18 = scalar_select %p46_p9, %s1125_s14, %s48_s6  }
  0x1c   : > { %s201_s26 = scalar_lea.hbm %s1425_s0, %s877_s19  ;;  %s195_s28 = scalar_lea.vmem [#allocation3], %s833_s11 }
  0x1d   : > { %s204_s29 = sshll.u32 %s195_s28, 4  ;;  %s202_s21 = sshll.u32 %s201_s26, 4  ;;  %s205_s29 = int_to_ptr.vmem [resolvable:$true] %s204_s29  ;;  %s203_s21 = int_to_ptr.hbm [resolvable:$true] %s202_s21 }
  0x1e   : > { %p924_p2 = pnand %p932_p7, %p1239_p3  ;;  %s192_s30 = scalar_lea.sflag [#allocation4], %s191_s10 }
  0x1f   : > { %s1142_s4 = smov 128   ;;  %s1143_s1 = smov 8  }
  0x20   : > { %926 = dma.hbm_to_vmem [thread:$0]  (!%p924_p2), %s203_s21, 4096, %s205_s29, %s192_s30, %s1142_s4, %s1142_s4, %s1143_s1  }
  0x21   : > { %216 = sbr.rel (%p1223_p8) target bundleno = 269 (0x10d), region = 32  ;;  %s1265_s6 = sand.u32 (!%p1223_p8), 1, %s1121_s13  }
  0x22   : > { %s837_s9 = sshll.u32 (!%p1223_p8), %s1265_s6, 8  ;;  %s219_s11 = scalar_lea.sflag (!%p1223_p8), [#allocation4], %s1265_s6 }
  0x23   : > { %s1271_s19 = scalar_lea.vmem (!%p1223_p8), [#allocation3], %s837_s9 }
  0x26   : > { %1104 = dma.done.wait (%p1210_p4), %s219_s11, 4096  }
  0x27   : > { %1106 = vsyncadd (%p1210_p4), %s219_s11, 4294963200 }
  0x28   : > { %1108 = dma.done.wait (%p1200_p1), [#allocation7], 1024  }
  0x29   : > { %1110 = vsyncadd (%p1200_p1), [#allocation7], 4294966272  ;;  %v885_v0 = vld [vmem:[#allocation6 + $0x38] sm:$0xff]  ;;  %v884_v1 = vld [vmem:[#allocation6 + $0x30] sm:$0xff]  ;;  %s1322_s22 = scalar_lea.vmem [#allocation8], %s837_s9  ;;  %s886_s27 = sshll.u32 %s1129_s15, 8 }
  0x2a   : > { %440 = vmatpush.bf16.msra.mxu0 %v885_v0  ;;  %887 = vmatpush.bf16.msra.mxu1 %v885_v0  ;;  %v883_v2 = vld [vmem:[#allocation6 + $0x28] sm:$0xff]  ;;  %v882_v3 = vld [vmem:[#allocation6 + $0x20] sm:$0xff]  ;;  %v881_v4 = vld [vmem:[#allocation6 + $0x18] sm:$0xff]  ;;  %s709_s24 = scalar_lea.hbm %s1428_s3, %s886_s27  ;;  %s710_s15 = sshll.u32 %s1322_s22, 4  ;;  %s711_s15 = int_to_ptr.vmem [resolvable:$true] %s710_s15 }
  0x2b   : > { %888 = vmatpush.bf16.msra.mxu2 %v885_v0  ;;  %889 = vmatpush.bf16.msra.mxu3 %v885_v0  ;;  %v880_v5 = vld [vmem:[#allocation6 + $0x10] sm:$0xff]  ;;  %v879_v6 = vld [vmem:[#allocation6 + $0x8] sm:$0xff]  ;;  %v878_v7 = vld [vmem:[#allocation6] sm:$0xff]  ;;  %s712_s25 = sshll.u32 %s709_s24, 4  ;;  %s697_s26 = scalar_lea.sflag [#allocation5], %s1265_s6  ;;  %s713_s25 = int_to_ptr.hbm [resolvable:$true] %s712_s25 }
  0x2c   : > { %v328_v8 = vld [vmem:[%s1271_s19] sm:$0xff]  ;;  %v329_v9 = vld [vmem:[%s1271_s19 + $0x8] sm:$0xff]  ;;  %v330_v20 = vld [vmem:[%s1271_s19 + $0x10] sm:$0xff]  ;;  %s1065_s28 = sshra.s32 %s713_s25, 4  ;;  %s1071_s4 = scalar_lea.hbm %s1428_s3, 512  ;;  %s1066_s28 = int_to_ptr.hbm [resolvable:$true] %s1065_s28 }
  0x2d   : > { %v336_v10 = vld [vmem:[%s1271_s19 + $0x40] sm:$0xff]  ;;  %v337_v11 = vld [vmem:[%s1271_s19 + $0x48] sm:$0xff]  ;;  %v360_v16 = vpack.c.bf16 %v329_v9, %v328_v8  ;;  %v331_v21 = vld [vmem:[%s1271_s19 + $0x18] sm:$0xff]  ;;  %s1067_s29 = scalar_lea.hbm %s1066_s28, 256  ;;  %p1072_p10 = scmp.lt.s32.totalorder %s1066_s28, %s1428_s3 }
  0x2e   : > { %441 = vmatpush.bf16.msra.mxu0 %v884_v1  ;;  %890 = vmatpush.bf16.msra.mxu1 %v884_v1  ;;  %v344_v12 = vld [vmem:[%s1271_s19 + $0x80] sm:$0xff]  ;;  %v345_v13 = vld [vmem:[%s1271_s19 + $0x88] sm:$0xff]  ;;  %v364_v17 = vpack.c.bf16 %v337_v11, %v336_v10  ;;  %v338_v22 = vld [vmem:[%s1271_s19 + $0x50] sm:$0xff]  ;;  %v361_v28 = vpack.c.bf16 %v331_v21, %v330_v20  ;;  %p1068_p1 = scmp.ne.s32.totalorder %s1066_s28, %s1067_s29  ;;  %p1073_p12 = scmp.lt.s32.totalorder %s1071_s4, %s1067_s29 }
  0x2f   : > { %891 = vmatpush.bf16.msra.mxu2 %v884_v1  ;;  %892 = vmatpush.bf16.msra.mxu3 %v884_v1  ;;  %v352_v14 = vld [vmem:[%s1271_s19 + $0xc0] sm:$0xff]  ;;  %v353_v15 = vld [vmem:[%s1271_s19 + $0xc8] sm:$0xff]  ;;  %v368_v18 = vpack.c.bf16 %v345_v13, %v344_v12  ;;  %v339_v23 = vld [vmem:[%s1271_s19 + $0x58] sm:$0xff] }
  0x30   : > { %v372_v19 = vpack.c.bf16 %v353_v15, %v352_v14  ;;  %v346_v24 = vld [vmem:[%s1271_s19 + $0x90] sm:$0xff]  ;;  %v347_v25 = vld [vmem:[%s1271_s19 + $0x98] sm:$0xff]  ;;  %v365_v29 = vpack.c.bf16 %v339_v23, %v338_v22  ;;  %v332_v32 = vld [vmem:[%s1271_s19 + $0x20] sm:$0xff]  ;;  %p1069_p4 = pnand %p1068_p1, %p1245_p5  ;;  %p1074_p13 = por %p1073_p12, %p1072_p10 }
  0x31   : > { %v354_v26 = vld [vmem:[%s1271_s19 + $0xd0] sm:$0xff]  ;;  %v355_v27 = vld [vmem:[%s1271_s19 + $0xd8] sm:$0xff]  ;;  %v369_v30 = vpack.c.bf16 %v347_v25, %v346_v24  ;;  %v333_v33 = vld [vmem:[%s1271_s19 + $0x28] sm:$0xff] }
  0x32   : > { %442 = vmatpush.bf16.msra.mxu0 %v883_v2  ;;  %893 = vmatpush.bf16.msra.mxu1 %v883_v2  ;;  %v373_v31 = vpack.c.bf16 %v355_v27, %v354_v26  ;;  %v340_v34 = vld [vmem:[%s1271_s19 + $0x60] sm:$0xff]  ;;  %v341_v35 = vld [vmem:[%s1271_s19 + $0x68] sm:$0xff]  ;;  %v362_v40 = vpack.c.bf16 %v333_v33, %v332_v32  ;;  %v334_v44 = vld [vmem:[%s1271_s19 + $0x30] sm:$0xff]  ;;  %p1070_p8 = pneg %p1069_p4 }
  0x33   : > { %894 = vmatpush.bf16.msra.mxu2 %v883_v2  ;;  %895 = vmatpush.bf16.msra.mxu3 %v883_v2  ;;  %v348_v36 = vld [vmem:[%s1271_s19 + $0xa0] sm:$0xff]  ;;  %v349_v37 = vld [vmem:[%s1271_s19 + $0xa8] sm:$0xff]  ;;  %v366_v41 = vpack.c.bf16 %v341_v35, %v340_v34  ;;  %v335_v45 = vld [vmem:[%s1271_s19 + $0x38] sm:$0xff] }
  0x34   : > { %v356_v38 = vld [vmem:[%s1271_s19 + $0xe0] sm:$0xff]  ;;  %v357_v39 = vld [vmem:[%s1271_s19 + $0xe8] sm:$0xff]  ;;  %v370_v42 = vpack.c.bf16 %v349_v37, %v348_v36  ;;  %v342_v46 = vld [vmem:[%s1271_s19 + $0x70] sm:$0xff]  ;;  %v363_v52 = vpack.c.bf16 %v335_v45, %v334_v44  ;;  %p1075_p0 = pnand %p1074_p13, %p1070_p8 }
  0x35   : > { %v374_v43 = vpack.c.bf16 %v357_v39, %v356_v38  ;;  %v343_v47 = vld [vmem:[%s1271_s19 + $0x78] sm:$0xff]  ;;  %v350_v48 = vld [vmem:[%s1271_s19 + $0xb0] sm:$0xff]  ;;  %v1316_v56 = vld [vmem:[%s1427_s2] ss:$0 sm:$0xff] }
  0x36   : > { %443 = vmatpush.bf16.msra.mxu0 %v882_v3  ;;  %896 = vmatpush.bf16.msra.mxu1 %v882_v3  ;;  %v351_v49 = vld [vmem:[%s1271_s19 + $0xb8] sm:$0xff]  ;;  %v358_v50 = vld [vmem:[%s1271_s19 + $0xf0] sm:$0xff]  ;;  %v367_v53 = vpack.c.bf16 %v343_v47, %v342_v46 }
  0x37   : > { %897 = vmatpush.bf16.msra.mxu2 %v882_v3  ;;  %898 = vmatpush.bf16.msra.mxu3 %v882_v3  ;;  %v359_v51 = vld [vmem:[%s1271_s19 + $0xf8] sm:$0xff]  ;;  %v371_v54 = vpack.c.bf16 %v351_v49, %v350_v48 }
  0x38   : > { %v375_v55 = vpack.c.bf16 %v359_v51, %v358_v50 }
  0x3a   : > { %444 = vmatpush.bf16.msra.mxu0 %v881_v4  ;;  %899 = vmatpush.bf16.msra.mxu1 %v881_v4 }
  0x3b   : > { %900 = vmatpush.bf16.msra.mxu2 %v881_v4  ;;  %901 = vmatpush.bf16.msra.mxu3 %v881_v4 }
  0x3e   : > { %445 = vmatpush.bf16.msra.mxu0 %v880_v5  ;;  %902 = vmatpush.bf16.msra.mxu1 %v880_v5 }
  0x3f   : > { %903 = vmatpush.bf16.msra.mxu2 %v880_v5  ;;  %904 = vmatpush.bf16.msra.mxu3 %v880_v5 }
  0x42   : > { %446 = vmatpush.bf16.msra.mxu0 %v879_v6  ;;  %905 = vmatpush.bf16.msra.mxu1 %v879_v6 }
  0x43   : > { %906 = vmatpush.bf16.msra.mxu2 %v879_v6  ;;  %907 = vmatpush.bf16.msra.mxu3 %v879_v6 }
  0x46   : > { %447 = vmatpush.bf16.msra.mxu0 %v878_v7  ;;  %908 = vmatpush.bf16.msra.mxu1 %v878_v7 }
  0x47   : > { %909 = vmatpush.bf16.msra.mxu2 %v878_v7  ;;  %910 = vmatpush.bf16.msra.mxu3 %v878_v7 }
  0x49   : > { %448 = vmatmul.bf16.vlgmr.msra.gmra.mxu0 %v360_v16  ;;  %468 = vmatmul.bf16.vlgmr.msra.gmra.mxu1 %v364_v17 }
  0x4a   : > { %488 = vmatmul.bf16.vlgmr.msra.gmra.mxu2 %v368_v18  ;;  %508 = vmatmul.bf16.vlgmr.msra.gmra.mxu3 %v372_v19 }
  0x59   : > { %453 = vmatmul.bf16.gmra.mxu0 %v361_v28  ;;  %473 = vmatmul.bf16.gmra.mxu1 %v365_v29 }
  0x5a   : > { %493 = vmatmul.bf16.gmra.mxu2 %v369_v30  ;;  %513 = vmatmul.bf16.gmra.mxu3 %v373_v31 }
  0x69   : > { %458 = vmatmul.bf16.gmra.mxu0 %v362_v40  ;;  %478 = vmatmul.bf16.gmra.mxu1 %v366_v41 }
  0x6a   : > { %498 = vmatmul.bf16.gmra.mxu2 %v370_v42  ;;  %518 = vmatmul.bf16.gmra.mxu3 %v374_v43 }
  0x79   : > { %463 = vmatmul.bf16.gmra.mxu0 %v363_v52  ;;  %483 = vmatmul.bf16.gmra.mxu1 %v367_v53 }
  0x7a   : > { %503 = vmatmul.bf16.gmra.mxu2 %v371_v54  ;;  %523 = vmatmul.bf16.gmra.mxu3 %v375_v55 }
  0xc6   : > { %v449_v57 = vpop.f32.mrf.mxu0  ;;  %v469_v58 = vpop.f32.mrf.mxu1 }
  0xc7   : > { %v632_v59 = vadd.f32 %v1316_v56, %v449_v57  ;;  %v640_v60 = vadd.f32 %v1316_v56, %v469_v58 }
  0xc9   : > { %664 = vst [vmem:[%s1322_s22] sm:$0xff] %v632_v59 }
  0xca   : > { %672 = vst [vmem:[%s1322_s22 + $0x40] sm:$0xff] %v640_v60 }
  0xcd   : > { %v489_v61 = vpop.f32.mrf.mxu2  ;;  %v509_v62 = vpop.f32.mrf.mxu3 }
  0xce   : > { %v648_v63 = vadd.f32 %v1316_v56, %v489_v61  ;;  %v656_v0 = vadd.f32 %v1316_v56, %v509_v62  ;;  %v451_v1 = vpop.f32.mrf.mxu0  ;;  %v471_v2 = vpop.f32.mrf.mxu1 }
  0xcf   : > { %v633_v3 = vadd.f32 %v1316_v56, %v451_v1  ;;  %v641_v4 = vadd.f32 %v1316_v56, %v471_v2 }
  0xd0   : > { %680 = vst [vmem:[%s1322_s22 + $0x80] sm:$0xff] %v648_v63 }
  0xd1   : > { %688 = vst [vmem:[%s1322_s22 + $0xc0] sm:$0xff] %v656_v0 }
  0xd2   : > { %665 = vst [vmem:[%s1322_s22 + $0x8] sm:$0xff] %v633_v3 }
  0xd3   : > { %673 = vst [vmem:[%s1322_s22 + $0x48] sm:$0xff] %v641_v4 }
  0xd5   : > { %v491_v5 = vpop.f32.mrf.mxu2  ;;  %v511_v6 = vpop.f32.mrf.mxu3 }
  0xd6   : > { %v649_v7 = vadd.f32 %v1316_v56, %v491_v5  ;;  %v657_v8 = vadd.f32 %v1316_v56, %v511_v6  ;;  %v454_v9 = vpop.f32.mrf.mxu0  ;;  %v474_v10 = vpop.f32.mrf.mxu1 }
  0xd7   : > { %v634_v11 = vadd.f32 %v1316_v56, %v454_v9  ;;  %v642_v12 = vadd.f32 %v1316_v56, %v474_v10 }
  0xd8   : > { %681 = vst [vmem:[%s1322_s22 + $0x88] sm:$0xff] %v649_v7 }
  0xd9   : > { %689 = vst [vmem:[%s1322_s22 + $0xc8] sm:$0xff] %v657_v8 }
  0xda   : > { %666 = vst [vmem:[%s1322_s22 + $0x10] sm:$0xff] %v634_v11 }
  0xdb   : > { %674 = vst [vmem:[%s1322_s22 + $0x50] sm:$0xff] %v642_v12 }
  0xdd   : > { %v494_v13 = vpop.f32.mrf.mxu2  ;;  %v514_v14 = vpop.f32.mrf.mxu3 }
  0xde   : > { %v650_v15 = vadd.f32 %v1316_v56, %v494_v13  ;;  %v658_v16 = vadd.f32 %v1316_v56, %v514_v14  ;;  %v456_v17 = vpop.f32.mrf.mxu0  ;;  %v476_v18 = vpop.f32.mrf.mxu1 }
  0xdf   : > { %v635_v19 = vadd.f32 %v1316_v56, %v456_v17  ;;  %v643_v20 = vadd.f32 %v1316_v56, %v476_v18 }
  0xe0   : > { %682 = vst [vmem:[%s1322_s22 + $0x90] sm:$0xff] %v650_v15 }
  0xe1   : > { %690 = vst [vmem:[%s1322_s22 + $0xd0] sm:$0xff] %v658_v16 }
  0xe2   : > { %667 = vst [vmem:[%s1322_s22 + $0x18] sm:$0xff] %v635_v19 }
  0xe3   : > { %675 = vst [vmem:[%s1322_s22 + $0x58] sm:$0xff] %v643_v20 }
  0xe5   : > { %v496_v21 = vpop.f32.mrf.mxu2  ;;  %v516_v22 = vpop.f32.mrf.mxu3 }
  0xe6   : > { %v651_v23 = vadd.f32 %v1316_v56, %v496_v21  ;;  %v659_v24 = vadd.f32 %v1316_v56, %v516_v22  ;;  %v459_v25 = vpop.f32.mrf.mxu0  ;;  %v479_v26 = vpop.f32.mrf.mxu1 }
  0xe7   : > { %v636_v27 = vadd.f32 %v1316_v56, %v459_v25  ;;  %v644_v28 = vadd.f32 %v1316_v56, %v479_v26 }
  0xe8   : > { %683 = vst [vmem:[%s1322_s22 + $0x98] sm:$0xff] %v651_v23 }
  0xe9   : > { %691 = vst [vmem:[%s1322_s22 + $0xd8] sm:$0xff] %v659_v24 }
  0xea   : > { %668 = vst [vmem:[%s1322_s22 + $0x20] sm:$0xff] %v636_v27 }
  0xeb   : > { %676 = vst [vmem:[%s1322_s22 + $0x60] sm:$0xff] %v644_v28 }
  0xed   : > { %v499_v29 = vpop.f32.mrf.mxu2  ;;  %v519_v30 = vpop.f32.mrf.mxu3 }
  0xee   : > { %v652_v31 = vadd.f32 %v1316_v56, %v499_v29  ;;  %v660_v32 = vadd.f32 %v1316_v56, %v519_v30  ;;  %v461_v33 = vpop.f32.mrf.mxu0  ;;  %v481_v34 = vpop.f32.mrf.mxu1 }
  0xef   : > { %v637_v35 = vadd.f32 %v1316_v56, %v461_v33  ;;  %v645_v36 = vadd.f32 %v1316_v56, %v481_v34 }
  0xf0   : > { %684 = vst [vmem:[%s1322_s22 + $0xa0] sm:$0xff] %v652_v31 }
  0xf1   : > { %692 = vst [vmem:[%s1322_s22 + $0xe0] sm:$0xff] %v660_v32 }
  0xf2   : > { %669 = vst [vmem:[%s1322_s22 + $0x28] sm:$0xff] %v637_v35 }
  0xf3   : > { %677 = vst [vmem:[%s1322_s22 + $0x68] sm:$0xff] %v645_v36 }
  0xf5   : > { %v501_v37 = vpop.f32.mrf.mxu2  ;;  %v521_v38 = vpop.f32.mrf.mxu3 }
  0xf6   : > { %v653_v39 = vadd.f32 %v1316_v56, %v501_v37  ;;  %v661_v40 = vadd.f32 %v1316_v56, %v521_v38  ;;  %v464_v41 = vpop.f32.mrf.mxu0  ;;  %v484_v42 = vpop.f32.mrf.mxu1 }
  0xf7   : > { %v638_v43 = vadd.f32 %v1316_v56, %v464_v41  ;;  %v646_v44 = vadd.f32 %v1316_v56, %v484_v42 }
  0xf8   : > { %685 = vst [vmem:[%s1322_s22 + $0xa8] sm:$0xff] %v653_v39 }
  0xf9   : > { %693 = vst [vmem:[%s1322_s22 + $0xe8] sm:$0xff] %v661_v40 }
  0xfa   : > { %670 = vst [vmem:[%s1322_s22 + $0x30] sm:$0xff] %v638_v43 }
  0xfb   : > { %678 = vst [vmem:[%s1322_s22 + $0x70] sm:$0xff] %v646_v44 }
  0xfd   : > { %v504_v45 = vpop.f32.mrf.mxu2  ;;  %v524_v46 = vpop.f32.mrf.mxu3 }
  0xfe   : > { %v654_v47 = vadd.f32 %v1316_v56, %v504_v45  ;;  %v662_v48 = vadd.f32 %v1316_v56, %v524_v46  ;;  %v466_v49 = vpop.f32.mrf.mxu0  ;;  %v486_v50 = vpop.f32.mrf.mxu1 }
  0xff   : > { %v639_v51 = vadd.f32 %v1316_v56, %v466_v49  ;;  %v647_v52 = vadd.f32 %v1316_v56, %v486_v50 }
 0x100   : > { %686 = vst [vmem:[%s1322_s22 + $0xb0] sm:$0xff] %v654_v47 }
 0x101   : > { %694 = vst [vmem:[%s1322_s22 + $0xf0] sm:$0xff] %v662_v48 }
 0x102   : > { %671 = vst [vmem:[%s1322_s22 + $0x38] sm:$0xff] %v639_v51 }
 0x103   : > { %679 = vst [vmem:[%s1322_s22 + $0x78] sm:$0xff] %v647_v52 }
 0x105   : > { %v506_v53 = vpop.f32.mrf.mxu2  ;;  %v526_v54 = vpop.f32.mrf.mxu3 }
 0x106   : > { %v655_v55 = vadd.f32 %v1316_v56, %v506_v53  ;;  %v663_v57 = vadd.f32 %v1316_v56, %v526_v54 }
 0x108   : > { %687 = vst [vmem:[%s1322_s22 + $0xb8] sm:$0xff] %v655_v55 }
 0x109   : > { %695 = vst [vmem:[%s1322_s22 + $0xf8] sm:$0xff] %v663_v57 }
 0x10a   : > { %1078 = shalt.err (!%p1075_p0)
}
 0x10b   : > { %s1144_s6 = smov 128   ;;  %s1145_s19 = smov 8  }
 0x10c   : > { %917 = dma.vmem_to_hbm [thread:$0]  (%p1245_p5), %s711_s15, 4096, %s713_s25, %s697_s26, %s1144_s6, %s1144_s6, %s1145_s19  }
 0x10d PF: > { %s727_s1 = sand.u32 1, %s1117_s12   ;;  %p928_p3 = pnand %p832_p11, %p1215_p6 }
 0x10e   : > { %s728_s20 = scalar_lea.sflag [#allocation5], %s727_s1 }
 0x10f   : > { %p929_p7 = pneg %p928_p3 }
 0x111   : > { %1112 = dma.done.wait (%p929_p7), %s728_s20, 4096  }
 0x112   : > { %1114 = vsyncadd (%p929_p7), %s728_s20, 4294963200  ;;  %s20_s17 = sadd.s32 1, %s1137_s17   ;;  %s1438_s12 = smov %s1121_s13 }
 0x113   : > { %p17_p9 = scmp.ge.s32.totalorder %s20_s17, 4   ;;  %s1439_s13 = smov %s1125_s14 }
 0x114   : > { %s1440_s14 = smov %s1254_s18  ;;  %s1441_s15 = smov %s1133_s16 }
 0x115   : > { %s1442_s16 = smov %s1444_s5  ;;  %19 = sbr.rel (!%p17_p9) target bundleno = 9 (0x9), region = 93 }
 0x11a   :  { %734 = vsyncpa [#allocation4], 1 }
 0x11b   :  { %736 = vsyncpa [#allocation4 + $0x1], 1 }
 0x11c   :  { %737 = vsyncpa [#allocation7], 1 }
 0x11d   :  { %738 = vsyncpa [#allocation5], 1 }
 0x11e   :  { %740 = vsyncpa [#allocation5 + $0x1], 1 }

</bundles_post_ra>
